<compile_context>
chip_gen: v7x
topology: tpu7x:2x2x1
jax: 0.10.0
libtpu: 0.0.40
codegen_flags: <defaults>
</compile_context>

<pallas_src>
import functools

import jax
import jax.numpy as jnp
from jax.experimental import pallas as pl
from jax.experimental.pallas import tpu as pltpu


def _round_up(a, b):
    return ((a + b - 1) // b) * b


# -----------------------------------------------------------------------------
# Pallas kernel: fused MLP (Linear -> Tanh -> Linear -> Tanh -> Linear)
#                + location/scale transform.  The last layer's columns were
# permuted / augmented in the wrapper so the matmul output layout is:
#   [0       : K*p    ] -> m       (K-major, p-minor)
#   [K*p     : 2*K*p  ] -> log_s   (K-major, p-minor)
#   [2*K*p   : 2*K*p+K] -> -sum_j log_s_{k,j}   (the log-det, folded into MXU)
# -----------------------------------------------------------------------------
def _cond_loc_scale_kernel(K, p,
                           x_ref, theta_ref,
                           w1_ref, b1_ref, w2_ref, b2_ref, w3_ref, b3_ref,
                           y_ref, ld_ref):
    Kp = K * p
    theta = theta_ref[...]                                            # [TN, d]
    h = jnp.tanh(jnp.dot(theta, w1_ref[...],
                         preferred_element_type=jnp.float32) + b1_ref[...])
    h = jnp.tanh(jnp.dot(h.astype(w2_ref.dtype), w2_ref[...],
                         preferred_element_type=jnp.float32) + b2_ref[...])
    out = jnp.dot(h.astype(w3_ref.dtype), w3_ref[...],
                  preferred_element_type=jnp.float32) + b3_ref[...]    # [TN, 2Kp+K]

    m = out[:, :Kp]                                                    # [TN, K*p]
    log_s = out[:, Kp:2 * Kp]                                          # [TN, K*p]
    x_t = jnp.tile(x_ref[...].astype(jnp.float32), (1, K))             # [TN, K*p]
    y_ref[...] = ((x_t - m) * jnp.exp(-log_s)).astype(y_ref.dtype)     # one store
    ld_ref[...] = out[:, 2 * Kp:].astype(ld_ref.dtype)                 # one store


# -----------------------------------------------------------------------------
# Wrapper-side (free, layout-only) rework of the final Linear layer.
# -----------------------------------------------------------------------------
def _prepare_final_layer(w3, b3, K, p):
    """Permute/augment the last Linear so its columns are [m | log_s | logdet]."""
    h2 = w3.shape[0]
    k_idx = jnp.arange(K)[:, None] * (2 * p)
    j_idx = jnp.arange(p)[None, :]
    m_cols = (k_idx + j_idx).reshape(-1)           # m_{k,j}     -> col k*2p + j
    s_cols = (k_idx + p + j_idx).reshape(-1)       # log_s_{k,j} -> col k*2p + p + j
    w3 = w3.astype(jnp.float32)
    b3 = b3.astype(jnp.float32).reshape(1, -1)
    w_m, w_s = w3[:, m_cols], w3[:, s_cols]
    b_m, b_s = b3[:, m_cols], b3[:, s_cols]
    w_ld = -w_s.reshape(h2, K, p).sum(-1)          # log-det folded into the matmul
    b_ld = -b_s.reshape(1, K, p).sum(-1)
    w3_aug = jnp.concatenate([w_m, w_s, w_ld], axis=1)   # [h2, 2*K*p + K]
    b3_aug = jnp.concatenate([b_m, b_s, b_ld], axis=1)   # [1,  2*K*p + K]
    return w3_aug, b3_aug


# -----------------------------------------------------------------------------
# Wrapper: flatten leading dims, tile over batch rows, reshape outputs back.
# -----------------------------------------------------------------------------
def conditional_location_scale_forward(x, theta, params, K, p, d,
                                       return_log_det=False, tile_n=512,
                                       weights_dtype=jnp.float32):
    (w1, b1), (w2, b2), (w3, b3) = params
    h1, h2 = w1.shape[1], w2.shape[1]
    w3_aug, b3_aug = _prepare_final_layer(w3, b3, K, p)
    out_dim = 2 * K * p + K

    batch_shape = x.shape[:-1]
    N = 1
    for s in batch_shape:
        N *= s
    x_flat = x.reshape(N, p).astype(jnp.float32)
    theta_flat = theta.reshape(N, d).astype(weights_dtype)  # bf16 stream on v6e/v7x

    # MXU streams in weights_dtype; biases + tanh/exp activations stay f32.
    w1c, w2c, w3c = (w.astype(weights_dtype) for w in (w1, w2, w3_aug))
    b1c = b1.astype(jnp.float32).reshape(1, -1)
    b2c = b2.astype(jnp.float32).reshape(1, -1)

    # Batch tiling: large tiles amortize the ~0.35 us/step pipeline overhead,
    # >= 2 grid steps keep both v7x TensorCores busy, tail rows zero-padded.
    tile_n = max(8, min(tile_n, _round_up((N + 1) // 2, 8)))
    grid_n = pl.cdiv(N, tile_n)
    n_pad = grid_n * tile_n
    if n_pad != N:
        x_flat = jnp.pad(x_flat, ((0, n_pad - N), (0, 0)))
        theta_flat = jnp.pad(theta_flat, ((0, n_pad - N), (0, 0)))

    row = lambda i: (i, 0)      # batch-tiled operands
    full = lambda i: (0, 0)     # weights/biases: same (resident) block every step

    kernel = functools.partial(_cond_loc_scale_kernel, K, p)
    y_flat, ld_flat = pl.pallas_call(
        kernel,
        out_shape=(
            jax.ShapeDtypeStruct((n_pad, K * p), jnp.float32),
            jax.ShapeDtypeStruct((n_pad, K), jnp.float32),
        ),
        grid_spec=pl.GridSpec(
            grid=(grid_n,),
            in_specs=[
                pl.BlockSpec((tile_n, p), row),       # x
                pl.BlockSpec((tile_n, d), row),       # theta
                pl.BlockSpec((d, h1), full),          # w1
                pl.BlockSpec((1, h1), full),          # b1
                pl.BlockSpec((h1, h2), full),         # w2
                pl.BlockSpec((1, h2), full),          # b2
                pl.BlockSpec((h2, out_dim), full),    # w3 (permuted + log-det cols)
                pl.BlockSpec((1, out_dim), full),     # b3 (permuted + log-det cols)
            ],
            out_specs=(
                pl.BlockSpec((tile_n, K * p), row),   # y       (single store)
                pl.BlockSpec((tile_n, K), row),       # log-det (single store)
            ),
        ),
        compiler_params=pltpu.CompilerParams(
            dimension_semantics=("parallel",)),
    )(x_flat, theta_flat, w1c, b1c, w2c, b2c, w3c, b3_aug)

    y = y_flat[:N].reshape(*batch_shape, K, p)
    ld = ld_flat[:N].reshape(*batch_shape, K)
    if return_log_det:
        return y, ld
    return y


# -----------------------------------------------------------------------------
# Pure-JAX reference for validation (f32, original column layout).
# -----------------------------------------------------------------------------
def reference_forward(x, theta, params, K, p):
    h = theta
    for i, (W, b) in enumerate(params):
        h = h @ W + b[0]
        if i < len(params) - 1:
            h = jnp.tanh(h)
    out = h.reshape(*x.shape[:-1], K, 2 * p)
    m = out[..., :p]
    log_s = out[..., p:]
    X = x[..., None, :]
    y = (X - m) / jnp.exp(log_s)
    ld = -log_s.sum(-1)
    return y, ld


# -----------------------------------------------------------------------------
# Deterministic parameter init (PyTorch Linear-style uniform(-1/sqrt(in), ..)).
# -----------------------------------------------------------------------------
def init_params(key, dims):
    params = []
    for h0, h1 in zip(dims, dims[1:]):
        key, kw, kb = jax.random.split(key, 3)
        bound = 1.0 / jnp.sqrt(h0)
        W = jax.random.uniform(kw, (h0, h1), jnp.float32, -bound, bound)
        b = jax.random.uniform(kb, (1, h1), jnp.float32, -bound, bound)
        params.append((W, b))
    return params


if __name__ == "__main__":
    # Module config: K mixture components, p = dim of x, d = dim of theta.
    K, p, d = 4, 2, 32
    hidden_dimensions = [32, 32]
    dims = [d] + hidden_dimensions + [2 * K * p]      # [32, 32, 32, 16]

    key = jax.random.PRNGKey(0)
    kp, kx, kt = jax.random.split(key, 3)
    params = init_params(kp, dims)

    # --- f32 path (tight tolerance); batch picked so the cdiv/padded tail and
    #     the >=2-step grid are both exercised (N=21 -> tile_n=16, grid=2).
    batch = (3, 7)
    x = jax.random.normal(kx, (*batch, p), jnp.float32)
    theta = jax.random.normal(kt, (*batch, d), jnp.float32)
    y, ld = conditional_location_scale_forward(
        x, theta, params, K, p, d, return_log_det=True)
    y, ld = jax.block_until_ready(y), jax.block_until_ready(ld)
    y_ref, ld_ref = reference_forward(x, theta, params, K, p)
    assert y.shape == (*batch, K, p) and ld.shape == (*batch, K)
    assert jnp.allclose(y, y_ref, rtol=1e-5, atol=1e-5), "y mismatch (f32)"
    assert jnp.allclose(ld, ld_ref, rtol=1e-5, atol=1e-5), "log_det mismatch (f32)"

    # --- bf16-streaming path (v6e/v7x recommendation): theta + weights bf16 on
    #     the MXU, f32 accumulation + f32 activations; looser tolerance vs f32.
    batch2 = (2, 8)
    x2 = jax.random.normal(jax.random.PRNGKey(1), (*batch2, p), jnp.float32)
    theta2 = jax.random.normal(jax.random.PRNGKey(2), (*batch2, d), jnp.float32)
    y2, ld2 = conditional_location_scale_forward(
        x2, theta2, params, K, p, d, return_log_det=True,
        weights_dtype=jnp.bfloat16)
    y2, ld2 = jax.block_until_ready(y2), jax.block_until_ready(ld2)
    y2_ref, ld2_ref = reference_forward(x2, theta2, params, K, p)
    assert jnp.allclose(y2, y2_ref, rtol=5e-2, atol=5e-2), "y mismatch (bf16)"
    assert jnp.allclose(ld2, ld2_ref, rtol=5e-2, atol=5e-2), "log_det mismatch (bf16)"

    print("KERNEL_OK")
</pallas_src>

<mosaic_0001>
module attributes {stable_mosaic.version = 11 : i64} {
  func.func @_cond_loc_scale_kernel(%arg0: i32, %arg1: memref<16x2xf32, #tpu.memory_space<vmem>>, %arg2: memref<16x32xf32, #tpu.memory_space<vmem>>, %arg3: memref<32x32xf32, #tpu.memory_space<vmem>>, %arg4: memref<1x32xf32, #tpu.memory_space<vmem>>, %arg5: memref<32x32xf32, #tpu.memory_space<vmem>>, %arg6: memref<1x32xf32, #tpu.memory_space<vmem>>, %arg7: memref<32x20xf32, #tpu.memory_space<vmem>>, %arg8: memref<1x20xf32, #tpu.memory_space<vmem>>, %arg9: memref<16x8xf32, #tpu.memory_space<vmem>>, %arg10: memref<16x4xf32, #tpu.memory_space<vmem>>) attributes {dimension_semantics = [#tpu.dimension_semantics<parallel>], iteration_bounds = array<i64: 2>, scalar_prefetch = 0 : i64, scratch_operands = 0 : i64, tpu.core_type = #tpu.core_type<tc>, window_params = [{transform_indices = @transform_0, window_bounds = array<i64: 16, 2>}, {transform_indices = @transform_1, window_bounds = array<i64: 16, 32>}, {pipeline_mode = #tpu.pipeline_mode<synchronous>, transform_indices = @transform_2, window_bounds = array<i64: 32, 32>}, {pipeline_mode = #tpu.pipeline_mode<synchronous>, transform_indices = @transform_3, window_bounds = array<i64: 1, 32>}, {pipeline_mode = #tpu.pipeline_mode<synchronous>, transform_indices = @transform_4, window_bounds = array<i64: 32, 32>}, {pipeline_mode = #tpu.pipeline_mode<synchronous>, transform_indices = @transform_5, window_bounds = array<i64: 1, 32>}, {pipeline_mode = #tpu.pipeline_mode<synchronous>, transform_indices = @transform_6, window_bounds = array<i64: 32, 20>}, {pipeline_mode = #tpu.pipeline_mode<synchronous>, transform_indices = @transform_7, window_bounds = array<i64: 1, 20>}, {transform_indices = @transform_8, window_bounds = array<i64: 16, 8>}, {transform_indices = @transform_9, window_bounds = array<i64: 16, 4>}]} {
    %c0 = arith.constant 0 : index
    %c0_0 = arith.constant 0 : index
    %0 = vector.load %arg2[%c0, %c0_0] : memref<16x32xf32, #tpu.memory_space<vmem>>, vector<16x32xf32>
    %c0_1 = arith.constant 0 : index
    %c0_2 = arith.constant 0 : index
    %1 = vector.load %arg3[%c0_1, %c0_2] : memref<32x32xf32, #tpu.memory_space<vmem>>, vector<32x32xf32>
    %cst = arith.constant dense<0.000000e+00> : vector<16x32xf32>
    %2 = tpu.matmul %0, %1, %cst {dimension_numbers = #tpu.dot_dimension_numbers<[1], [0], [0], [1], [0, 0, 1, 1], [], []>} : vector<16x32xf32>, vector<32x32xf32>, vector<16x32xf32> -> vector<16x32xf32>
    %c0_3 = arith.constant 0 : index
    %c0_4 = arith.constant 0 : index
    %3 = vector.load %arg4[%c0_3, %c0_4] : memref<1x32xf32, #tpu.memory_space<vmem>>, vector<1x32xf32>
    %4 = vector.broadcast %3 : vector<1x32xf32> to vector<16x32xf32>
    %5 = arith.addf %2, %4 : vector<16x32xf32>
    %6 = math.tanh %5 : vector<16x32xf32>
    %c0_5 = arith.constant 0 : index
    %c0_6 = arith.constant 0 : index
    %7 = vector.load %arg5[%c0_5, %c0_6] : memref<32x32xf32, #tpu.memory_space<vmem>>, vector<32x32xf32>
    %cst_7 = arith.constant dense<0.000000e+00> : vector<16x32xf32>
    %8 = tpu.matmul %6, %7, %cst_7 {dimension_numbers = #tpu.dot_dimension_numbers<[1], [0], [0], [1], [0, 0, 1, 1], [], []>} : vector<16x32xf32>, vector<32x32xf32>, vector<16x32xf32> -> vector<16x32xf32>
    %c0_8 = arith.constant 0 : index
    %c0_9 = arith.constant 0 : index
    %9 = vector.load %arg6[%c0_8, %c0_9] : memref<1x32xf32, #tpu.memory_space<vmem>>, vector<1x32xf32>
    %10 = vector.broadcast %9 : vector<1x32xf32> to vector<16x32xf32>
    %11 = arith.addf %8, %10 : vector<16x32xf32>
    %12 = math.tanh %11 : vector<16x32xf32>
    %c0_10 = arith.constant 0 : index
    %c0_11 = arith.constant 0 : index
    %13 = vector.load %arg7[%c0_10, %c0_11] : memref<32x20xf32, #tpu.memory_space<vmem>>, vector<32x20xf32>
    %cst_12 = arith.constant dense<0.000000e+00> : vector<16x20xf32>
    %14 = tpu.matmul %12, %13, %cst_12 {dimension_numbers = #tpu.dot_dimension_numbers<[1], [0], [0], [1], [0, 0, 1, 1], [], []>} : vector<16x32xf32>, vector<32x20xf32>, vector<16x20xf32> -> vector<16x20xf32>
    %c0_13 = arith.constant 0 : index
    %c0_14 = arith.constant 0 : index
    %15 = vector.load %arg8[%c0_13, %c0_14] : memref<1x20xf32, #tpu.memory_space<vmem>>, vector<1x20xf32>
    %16 = vector.broadcast %15 : vector<1x20xf32> to vector<16x20xf32>
    %17 = arith.addf %14, %16 : vector<16x20xf32>
    %18 = vector.extract_strided_slice %17 {offsets = [0, 0], sizes = [16, 8], strides = [1, 1]} : vector<16x20xf32> to vector<16x8xf32>
    %19 = vector.extract_strided_slice %17 {offsets = [0, 8], sizes = [16, 8], strides = [1, 1]} : vector<16x20xf32> to vector<16x8xf32>
    %c0_15 = arith.constant 0 : index
    %c0_16 = arith.constant 0 : index
    %20 = vector.load %arg1[%c0_15, %c0_16] : memref<16x2xf32, #tpu.memory_space<vmem>>, vector<16x2xf32>
    %21 = tpu.concatenate %20, %20, %20, %20 in 1 : vector<16x2xf32>, vector<16x2xf32>, vector<16x2xf32>, vector<16x2xf32> -> vector<16x8xf32>
    %22 = arith.subf %21, %18 : vector<16x8xf32>
    %cst_17 = arith.constant 0.000000e+00 : f32
    %23 = vector.broadcast %cst_17 : f32 to vector<16x8xf32>
    %24 = arith.subf %23, %19 : vector<16x8xf32>
    %25 = math.exp %24 : vector<16x8xf32>
    %26 = arith.mulf %22, %25 : vector<16x8xf32>
    %c0_18 = arith.constant 0 : index
    %c0_19 = arith.constant 0 : index
    %27 = vector.load %arg9[%c0_18, %c0_19] : memref<16x8xf32, #tpu.memory_space<vmem>>, vector<16x8xf32>
    tpu.vector_store %arg9[%c0_18, %c0_19], %26 {strides = array<i32>} : memref<16x8xf32, #tpu.memory_space<vmem>>, vector<16x8xf32>,
    %28 = vector.extract_strided_slice %17 {offsets = [0, 16], sizes = [16, 4], strides = [1, 1]} : vector<16x20xf32> to vector<16x4xf32>
    %c0_20 = arith.constant 0 : index
    %c0_21 = arith.constant 0 : index
    %29 = vector.load %arg10[%c0_20, %c0_21] : memref<16x4xf32, #tpu.memory_space<vmem>>, vector<16x4xf32>
    tpu.vector_store %arg10[%c0_20, %c0_21], %28 {strides = array<i32>} : memref<16x4xf32, #tpu.memory_space<vmem>>, vector<16x4xf32>,
    return
  }
  func.func @transform_0(%arg0: i32) -> (i32, i32) {
    %c0_i32 = arith.constant 0 : i32
    %c0_i32_0 = arith.constant 0 : i32
    return %arg0, %c0_i32 : i32, i32
  }
  func.func @transform_1(%arg0: i32) -> (i32, i32) {
    %c0_i32 = arith.constant 0 : i32
    %c0_i32_0 = arith.constant 0 : i32
    return %arg0, %c0_i32 : i32, i32
  }
  func.func @transform_2(%arg0: i32) -> (i32, i32) {
    %c0_i32 = arith.constant 0 : i32
    %c0_i32_0 = arith.constant 0 : i32
    %c0_i32_1 = arith.constant 0 : i32
    return %c0_i32, %c0_i32_0 : i32, i32
  }
  func.func @transform_3(%arg0: i32) -> (i32, i32) {
    %c0_i32 = arith.constant 0 : i32
    %c0_i32_0 = arith.constant 0 : i32
    %c0_i32_1 = arith.constant 0 : i32
    return %c0_i32, %c0_i32_0 : i32, i32
  }
  func.func @transform_4(%arg0: i32) -> (i32, i32) {
    %c0_i32 = arith.constant 0 : i32
    %c0_i32_0 = arith.constant 0 : i32
    %c0_i32_1 = arith.constant 0 : i32
    return %c0_i32, %c0_i32_0 : i32, i32
  }
  func.func @transform_5(%arg0: i32) -> (i32, i32) {
    %c0_i32 = arith.constant 0 : i32
    %c0_i32_0 = arith.constant 0 : i32
    %c0_i32_1 = arith.constant 0 : i32
    return %c0_i32, %c0_i32_0 : i32, i32
  }
  func.func @transform_6(%arg0: i32) -> (i32, i32) {
    %c0_i32 = arith.constant 0 : i32
    %c0_i32_0 = arith.constant 0 : i32
    %c0_i32_1 = arith.constant 0 : i32
    return %c0_i32, %c0_i32_0 : i32, i32
  }
  func.func @transform_7(%arg0: i32) -> (i32, i32) {
    %c0_i32 = arith.constant 0 : i32
    %c0_i32_0 = arith.constant 0 : i32
    %c0_i32_1 = arith.constant 0 : i32
    return %c0_i32, %c0_i32_0 : i32, i32
  }
  func.func @transform_8(%arg0: i32) -> (i32, i32) {
    %c0_i32 = arith.constant 0 : i32
    %c0_i32_0 = arith.constant 0 : i32
    return %arg0, %c0_i32 : i32, i32
  }
  func.func @transform_9(%arg0: i32) -> (i32, i32) {
    %c0_i32 = arith.constant 0 : i32
    %c0_i32_0 = arith.constant 0 : i32
    return %arg0, %c0_i32 : i32, i32
  }
}

</mosaic_0001>

<bundles_post_ra>
// kernel: tpu_custom_call.1
= control target key start
LH: loop header
LB: loop body
LE: loop exit
PB: predicated region body
PF: predicated region fallthrough
CT: control target
= control target key end

     0   :  { %s1006_s30 = smov 0   ;;  %s1090_s0 = inlined_call_operand.vmem [shape: f32[32,2], index: 0, kind: input, shape index: {}]   ;;  %s1091_s1 = inlined_call_operand.vmem [shape: f32[32,32], index: 1, kind: input, shape index: {}]   ;;  %s1092_s2 = inlined_call_operand.vmem [shape: f32[32,32], index: 2, kind: input, shape index: {}]   ;;  %s1093_s3 = inlined_call_operand.vmem [shape: f32[1,32], index: 3, kind: input, shape index: {}]   ;;  %s1094_s4 = inlined_call_operand.vmem [shape: f32[32,32], index: 4, kind: input, shape index: {}]   ;;  %s1095_s5 = inlined_call_operand.vmem [shape: f32[1,32], index: 5, kind: input, shape index: {}]   ;;  %s1096_s6 = inlined_call_operand.vmem [shape: f32[32,20], index: 6, kind: input, shape index: {}]   ;;  %s1097_s7 = inlined_call_operand.vmem [shape: f32[1,20], index: 7, kind: input, shape index: {}]   ;;  %s1098_s8 = inlined_call_operand.vmem [shape: f32[32,8], index: 8, kind: output, shape index: {0}]   ;;  %s1099_s9 = inlined_call_operand.vmem [shape: f32[32,4], index: 9, kind: output, shape index: {1}]  }
   0x1 LB: > { %s819_s10 = sadd.s32 4294967295, %s949_s30   ;;  %p823_p0 = scmp.ge.s32.totalorder %s949_s30, 1  ;;  %s949_s30 = sphi %s1006_s30, %s20_s30  }
   0x2   : > { %p302_p1 = scmp.lt.s32.totalorder %s949_s30, 3 }
   0x4   : > { %p303_p2 = pnand %p823_p0, %p302_p1 }
   0x5   : > { %v374_v0 = vld [vmem:[%s1092_s2] sm:$0xff] (!%p303_p2)  ;;  %v375_v1 = vld [vmem:[%s1092_s2 + $0x8] sm:$0xff] (!%p303_p2)  ;;  %v376_v2 = vld [vmem:[%s1092_s2 + $0x10] sm:$0xff] (!%p303_p2)  ;;  %s824_s17 = sshll.u32 (!%p303_p2), %s819_s10, 1  ;;  %vm385_vm0 = vcmask (!%p303_p2), 261120   ;;  %s951_s26 = smov (!%p303_p2), 4  }
   0x6   : > { %306 = sbr.rel (%p303_p2) target bundleno = 822 (0x336), region = 52  ;;  %v894_v3 = vpack.c.bf16 (!%p303_p2), %v375_v1, %v374_v0  ;;  %v377_v4 = vld [vmem:[%s1092_s2 + $0x18] sm:$0xff] (!%p303_p2)  ;;  %p349_p3 = scmp.lt.s32.totalorder (!%p303_p2), %s824_s17, 3  ;;  %v469_v8 = vld [vmem:[%s1094_s4] sm:$0xff] (!%p303_p2)  ;;  %v470_v9 = vld [vmem:[%s1094_s4 + $0x8] sm:$0xff] (!%p303_p2)  ;;  %vm677_vm1 = vcmask (!%p303_p2), 15360  }
   0x7   : > { %v898_v5 = vpack.c.bf16 (!%p303_p2), %v377_v4, %v376_v2  ;;  %v471_v10 = vld [vmem:[%s1094_s4 + $0x10] sm:$0xff] (!%p303_p2)  ;;  %v902_v11 = vpack.c.bf16 (!%p303_p2), %v470_v9, %v469_v8  ;;  %v472_v12 = vld [vmem:[%s1094_s4 + $0x18] sm:$0xff] (!%p303_p2)  ;;  %v832_v14 = vld [vmem:[%s1093_s3] ss:$0 sm:$0xff] (!%p303_p2)  ;;  %s952_s27 = smov (!%p303_p2), 2   ;;  %s953_s28 = smov (!%p303_p2), 6  }
   0x8   : > { %895 = vmatprep.subr.bf16.mxu0 (!%p303_p2), %v894_v3  ;;  %v906_v13 = vpack.c.bf16 (!%p303_p2), %v472_v12, %v471_v10  ;;  %v563_v21 = vld [vmem:[%s1096_s6] sm:$0xff] (!%p303_p2)  ;;  %v564_v22 = vld [vmem:[%s1096_s6 + $0x8] sm:$0xff] (!%p303_p2)  ;;  %v565_v23 = vld [vmem:[%s1096_s6 + $0x10] sm:$0xff] (!%p303_p2)  ;;  %s954_s13 = smov (!%p303_p2), 120   ;;  %s955_s14 = smov (!%p303_p2), 112   ;;  %vm680_vm2 = vcmask (!%p303_p2), 31744  }
   0x9   : > { %897 = vmatpush3.bf16.msra.mxu0 (!%p303_p2), %v894_v3  ;;  %903 = vmatprep.subr.bf16.mxu1 (!%p303_p2), %v902_v11  ;;  %v910_v24 = vpack.c.bf16 (!%p303_p2), %v564_v22, %v563_v21  ;;  %v566_v25 = vld [vmem:[%s1096_s6 + $0x18] sm:$0xff] (!%p303_p2)  ;;  %v835_v29 = vld [vmem:[%s1095_s5] ss:$0 sm:$0xff] (!%p303_p2)  ;;  %vm683_vm3 = vcmask (!%p303_p2), 48128   ;;  %vm704_vm4 = vcmask (!%p303_p2), 64512  }
   0xa   : > { %899 = vmatprep.subr.bf16.mxu0 (!%p303_p2), %v898_v5  ;;  %905 = vmatpush3.bf16.msra.mxu1 (!%p303_p2), %v902_v11  ;;  %v914_v26 = vpack.c.bf16 (!%p303_p2), %v566_v25, %v565_v23  ;;  %v838_v36 = vld [vmem:[%s1097_s7] ss:$0 sm:$0xff] (!%p303_p2) }
   0xb   : > { %907 = vmatprep.subr.bf16.mxu1 (!%p303_p2), %v906_v13 }
   0xd   : > { %s1101_s17 = smov (!%p349_p3, %s824_s17), 3  ;;  %901 = vmatpush3.bf16.msra.mxu0 %v898_v5 }
   0xe   : > { %s1026_s20 = sshll.u32 %s1101_s17, 3  ;;  %909 = vmatpush3.bf16.msra.mxu1 %v906_v13  ;;  %911 = vmatprep.subr.bf16.mxu0 %v910_v24 }
   0xf   : > { %s358_s23 = scalar_lea.vmem %s1091_s1, %s1026_s20  ;;  %s352_s25 = scalar_lea.vmem %s1090_s0, %s1026_s20 }
  0x10   : > { %v372_v6 = vld [vmem:[%s358_s23] sm:$0xff]  ;;  %v373_v7 = vld [vmem:[%s358_s23 + $0x8] sm:$0xff]  ;;  %s364_s17 = scalar_lea.vmem %s1098_s8, %s1026_s20  ;;  %s370_s21 = scalar_lea.vmem %s1099_s9, %s1026_s20 }
  0x11   : > { %869 = vmatprep.mubr.msk.f32.mxu0 %vm385_vm0, %v372_v6  ;;  %v655_v27 = vld [vmem:[%s352_s25] sm:$0xff]  ;;  %v656_v28 = vld [vmem:[%s352_s25 + $0x8] sm:$0xff] }
  0x12   : > { %870 = vmatmul.mubr.msk.f32.vlgmr.msra.gmra.mrb[0].mxu0 %vm385_vm0, %v373_v7  ;;  %665 = vrot.lane.b32.xlu1 %v655_v27, %s951_s26 }
  0x13   : > { %913 = vmatpush3.bf16.msra.mxu0 %v910_v24  ;;  %659 = vrot.lane.b32.xlu0 %v655_v27, %s952_s27 }
  0x14   : > { %915 = vmatprep.subr.bf16.mxu0 %v914_v26 }
  0x16   : > { %667 = vrot.lane.b32.xlu1 %v656_v28, %s951_s26 }
  0x17   : > { %917 = vmatpush3.bf16.msra.mxu0 %v914_v26  ;;  %661 = vrot.lane.b32.xlu0 %v656_v28, %s952_s27 }
  0x1a   : > { %673 = vrot.lane.b32.xlu1 %v656_v28, %s953_s28 }
  0x1b   : > { %671 = vrot.lane.b32.xlu0 %v655_v27, %s953_s28 }
  0x84   : > { %v666_v48 = vpop.permute.xlu1 %665 }
  0x85   : > { %v660_v47 = vpop.permute.xlu0 %659 }
  0x86   : > { %v678_v51 = vsel %vm677_vm1, %v655_v27, %v660_v47 }
  0x87   : > { %v681_v53 = vsel %vm680_vm2, %v678_v51, %v666_v48 }
  0x88   : > { %v668_v50 = vpop.permute.xlu1 %667 }
  0x89   : > { %v662_v49 = vpop.permute.xlu0 %661 }
  0x8a   : > { %v679_v52 = vsel %vm677_vm1, %v656_v28, %v662_v49 }
  0x8b   : > { %v682_v56 = vsel %vm680_vm2, %v679_v52, %v668_v50 }
  0x8c   : > { %v674_v55 = vpop.permute.xlu1 %673 }
  0x8d   : > { %v672_v54 = vpop.permute.xlu0 %671  ;;  %v685_v58 = vsel %vm683_vm3, %v682_v56, %v674_v55 }
  0x8e   : > { %v684_v57 = vsel %vm683_vm3, %v681_v53, %v672_v54 }
  0xe5   : > { %v871_v15 = vpop.f32.mrb[0].mxu0 }
  0xe6   : > { %v464_v16 = vadd.f32 %v871_v15, %v832_v14  ;;  %v458_v17 = vpop.f32.mrb[1].mxu0 }
  0xe7   : > { %v459_v18 = vadd.f32 %v832_v14, %v458_v17 }
  0xe9   : > { %931 = vtanh.f32 %v459_v18 }
  0xea   : > { %933 = vtanh.f32 %v464_v16 }
  0xf3   : > { %v932_v19 = vpop.eup %931 }
  0xf4   : > { %v934_v20 = vpop.eup %933  ;;  %880 = vmatprep.mubr.msk.f32.mxu1 %vm385_vm0, %v932_v19 }
  0xf5   : > { %881 = vmatmul.mubr.msk.f32.vlgmr.msra.gmra.mrb[0].mxu1 %vm385_vm0, %v934_v20 }
 0x1c8   : > { %v882_v30 = vpop.f32.mrb[0].mxu1 }
 0x1c9   : > { %v558_v31 = vadd.f32 %v882_v30, %v835_v29  ;;  %v552_v32 = vpop.f32.mrb[1].mxu1 }
 0x1ca   : > { %v553_v33 = vadd.f32 %v835_v29, %v552_v32 }
 0x1cc   : > { %935 = vtanh.f32 %v553_v33 }
 0x1cd   : > { %937 = vtanh.f32 %v558_v31 }
 0x1d6   : > { %v936_v34 = vpop.eup %935 }
 0x1d7   : > { %v938_v35 = vpop.eup %937  ;;  %891 = vmatprep.mubr.msk.f32.mxu0 %vm385_vm0, %v936_v34 }
 0x1d8   : > { %892 = vmatmul.mubr.msk.f32.vlgmr.msra.gmra.mrb[2].mxu0 %vm385_vm0, %v938_v35 }
 0x2ab   : > { %v893_v37 = vpop.f32.mrb[2].mxu0 }
 0x2ac   : > { %v652_v38 = vadd.f32 %v893_v37, %v838_v36  ;;  %v646_v39 = vpop.f32.mrb[3].mxu0 }
 0x2ad   : > { %v647_v40 = vadd.f32 %v838_v36, %v646_v39 }
 0x2ae   : > { %v689_v41 = vsub.f32 0.0, %v652_v38  ;;  %v687_v61 = vsub.f32 %v685_v58, %v652_v38 }
 0x2af   : > { %v688_v42 = vsub.f32 0.0, %v647_v40  ;;  %v686_v60 = vsub.f32 %v684_v57, %v647_v40 }
 0x2b0   : > { %v692_v43 = vmul.f32 1.442695, %v689_v41 }
 0x2b1   : > { %v690_v44 = vmul.f32 1.442695, %v688_v42 }
 0x2b2   : > { %939 = vpow2.f32 %v692_v43 }
 0x2b3   : > { %941 = vpow2.f32 %v690_v44 }
 0x2bc   : > { %v940_v45 = vpop.eup %939 }
 0x2bd   : > { %v942_v46 = vpop.eup %941  ;;  %698 = vrot.lane.b32.xlu1 %v940_v45, %s954_s13 }
 0x2be   : > { %696 = vrot.lane.b32.xlu0 %v942_v46, %s954_s13 }
 0x2c1   : > { %711 = vrot.lane.b32.xlu1 %v652_v38, %s955_s14 }
 0x2c2   : > { %709 = vrot.lane.b32.xlu0 %v647_v40, %s955_s14 }
 0x32f   : > { %v699_v59 = vpop.permute.xlu1 %698 }
 0x330   : > { %v697_v62 = vpop.permute.xlu0 %696  ;;  %v703_v0 = vmul.f32 %v699_v59, %v687_v61 }
 0x331   : > { %v702_v63 = vmul.f32 %v697_v62, %v686_v60 }
 0x332   : > { %706 = vst.msk [vmem:[%s364_s17 + $0x8] sm:$0xff] %vm704_vm4, %v703_v0 }
 0x333   : > { %705 = vst.msk [vmem:[%s364_s17] sm:$0xff] %vm704_vm4, %v702_v63  ;;  %v712_v2 = vpop.permute.xlu1 %711 }
 0x334   : > { %v710_v1 = vpop.permute.xlu0 %709  ;;  %716 = vst.msk [vmem:[%s370_s21 + $0x8] sm:$0xff] %vm680_vm2, %v712_v2 }
 0x335   : > { %715 = vst.msk [vmem:[%s370_s21] sm:$0xff] %vm680_vm2, %v710_v1 }
 0x336 PF: > { %s20_s30 = sadd.s32 1, %s949_s30  }
 0x337   : > { %p17_p4 = scmp.ge.s32.totalorder %s20_s30, 4  }
 0x339   :  { %19 = sbr.rel (!%p17_p4) target bundleno = 1 (0x1), region = 97 }

</bundles_post_ra>
